<compile_context>
chip_gen: v7x
topology: tpu7x:2x2x1
jax: 0.10.0
libtpu: 0.0.40
codegen_flags: <defaults>
</compile_context>

<pallas_src>
import functools

import jax
import jax.numpy as jnp
from jax.experimental import pallas as pl
from jax.experimental.pallas import tpu as pltpu

_LANE = 128


def _round_up(x, m):
    return ((x + m - 1) // m) * m


def _vmem_budget_bytes():
    """Per-generation VMEM budget with headroom for Mosaic internal scratch."""
    try:
        cap = int(pltpu.get_tpu_info().vmem_capacity_bytes)
    except Exception:
        cap = 64 * 1024 * 1024          # conservative fallback, legal everywhere
    #   v7x : 64 MiB physical  -> ~52 MiB budget
    #   v5e / v6e: 128 MiB     -> ~116 MiB budget
    return max(16 * 1024 * 1024, cap - 12 * 1024 * 1024)


def _choose_tiling(n, fout_pad, budget):
    """Pick (N_pad, row tile tm, K tile tk) for the aggregation kernel."""
    n_pad0 = _round_up(max(n, 1), _LANE)   # A columns lane-dense; rows 32-multiple (int8)

    def footprint(tm, tk):
        a_bytes = 2 * tm * tk * 1            # int8 A tile, double buffered
        xw_bytes = 2 * tk * fout_pad * 2     # bf16 xw tile, double buffered
        drow_bytes = 2 * tm * _LANE * 4      # (tm,1) f32 block lane-pads to 128
        bias_bytes = 2 * 8 * fout_pad * 4    # (1,fout) f32 sublane-pads to 8
        acc_bytes = tm * fout_pad * 4        # fp32 accumulator scratch
        out_bytes = 2 * tm * fout_pad * 4    # output block (fp32 worst case), 2 bufs
        return a_bytes + xw_bytes + drow_bytes + bias_bytes + acc_bytes + out_bytes

    tm, tk = 128, 128
    found = False
    for cand_tm in (512, 256, 128):          # big row tiles amortize ~0.35us/step
        for cand_tk in (1024, 512, 256, 128):
            if footprint(cand_tm, cand_tk) <= budget:
                tm, tk = cand_tm, cand_tk
                found = True
                break
        if found:
            break

    tm = min(tm, n_pad0)
    tk = min(tk, n_pad0)
    n_pad = _round_up(n_pad0, max(tm, tk))   # powers of two -> divisible by both
    return n_pad, tm, tk


def _invariant_spec(block_shape, index_map, single_buffer):
    """BlockSpec for a grid-invariant operand (optionally single-buffered)."""
    if single_buffer:
        return pl.BlockSpec(block_shape, index_map, pipeline_mode=pl.Buffered(1))
    return pl.BlockSpec(block_shape, index_map)


# ----------------------------- kernels ------------------------------------ #

def feature_transform_kernel(x_ref, w_ref, d_col_ref, xw_ref):
    # x_ref:  [tm, Fin]   bf16   node-feature row tile
    # w_ref:  [Fin, Fout] bf16   weight (lane-padded), grid-invariant
    # d_col:  [tm, 1]     f32    column-side D^-1/2 for these rows
    # xw_ref: [tm, Fout]  bf16   (X @ W) * D^-1/2, streamed RHS of aggregation
    xw = jnp.dot(x_ref[...], w_ref[...], preferred_element_type=jnp.float32)
    xw_ref[...] = (xw * d_col_ref[...]).astype(xw_ref.dtype)


def aggregate_kernel(a_ref, xw_ref, d_row_ref, b_ref, o_ref, acc_ref,
                     *, num_valid, activation):
    # a_ref:   [tm, tk]    int8   raw adjacency tile (counts + self-loops)
    # xw_ref:  [tk, Fout]  bf16   hoisted, column-scaled feature transform
    # d_row:   [tm, 1]     f32    row-side D^-1/2
    # b_ref:   [1, Fout]   f32    bias (grid-invariant)
    # o_ref:   [tm, Fout]         output block (resident across the K axis)
    # acc_ref: [tm, Fout]  f32    VMEM accumulator scratch
    k = pl.program_id(1)

    @pl.when(k == 0)
    def _():
        acc_ref[...] = jnp.zeros_like(acc_ref)

    # int8 -> bf16 cast rides a spare VALU slot under the DMA/MXU bottleneck.
    a_bf16 = a_ref[...].astype(jnp.bfloat16)
    acc_ref[...] += jnp.dot(a_bf16, xw_ref[...],
                            preferred_element_type=jnp.float32)

    @pl.when(k == pl.num_programs(1) - 1)
    def _():
        z = d_row_ref[...] * acc_ref[...] + b_ref[...]
        if activation == "relu":
            o_ref[...] = jnp.maximum(z, 0.0).astype(o_ref.dtype)
        else:  # log_softmax over the valid classes (mask lane padding)
            col = jax.lax.broadcasted_iota(jnp.int32, z.shape, 1)
            z = jnp.where(col < num_valid, z, -1e30)
            m = jnp.max(z, axis=-1, keepdims=True)
            s = z - m
            lse = jnp.log(jnp.sum(jnp.exp(s), axis=-1, keepdims=True))
            o_ref[...] = (s - lse).astype(o_ref.dtype)


# ------------------------------ wrappers ----------------------------------- #

def build_graph_operands(edge_index, num_nodes, n_pad):
    """int8 raw adjacency (scatter-ADD counts + self-loops) and D^-1/2."""
    src, dst = edge_index[0], edge_index[1]
    a = jnp.zeros((num_nodes, num_nodes), jnp.float32)
    a = a.at[dst, src].add(1.0)                  # messages flow src -> dst
    diag = jnp.arange(num_nodes)
    a = a.at[diag, diag].add(1.0)                # self-loops
    deg = a.sum(axis=1)
    d_inv_sqrt = jnp.where(deg > 0, jax.lax.rsqrt(deg), 0.0)

    a_pad = jnp.zeros((n_pad, n_pad), jnp.int8)
    a_pad = a_pad.at[:num_nodes, :num_nodes].set(a.astype(jnp.int8))
    d_pad = jnp.zeros((n_pad, 1), jnp.float32).at[:num_nodes, 0].set(d_inv_sqrt)
    return a_pad, d_pad


def _gcn_layer(a_pad, d_pad, feat, w_pad, b_pad, *, tm, tk, out_dtype,
               activation, num_valid, vmem_limit, single_buffer):
    n_pad = a_pad.shape[0]
    fin = feat.shape[1]
    fout = w_pad.shape[1]

    # 1) Hoisted feature transform: xw = (X @ W) * D^-1/2 (column side), bf16.
    #    Computed exactly once per layer (not once per A row tile).
    xw = pl.pallas_call(
        feature_transform_kernel,
        out_shape=jax.ShapeDtypeStruct((n_pad, fout), jnp.bfloat16),
        grid=(n_pad // tm,),
        in_specs=[
            pl.BlockSpec((tm, fin), lambda i: (i, 0)),
            _invariant_spec((fin, fout), lambda i: (0, 0), single_buffer),
            pl.BlockSpec((tm, 1), lambda i: (i, 0)),
        ],
        out_specs=pl.BlockSpec((tm, fout), lambda i: (i, 0)),
        compiler_params=pltpu.CompilerParams(
            dimension_semantics=("parallel",),
            vmem_limit_bytes=vmem_limit),
    )(feat, w_pad, d_pad)

    # 2) Row x K tiled aggregation: out = D^-1/2 * (A @ xw) + b, then activation.
    kernel = functools.partial(aggregate_kernel,
                               num_valid=num_valid, activation=activation)
    return pl.pallas_call(
        kernel,
        out_shape=jax.ShapeDtypeStruct((n_pad, fout), out_dtype),
        grid=(n_pad // tm, n_pad // tk),
        in_specs=[
            pl.BlockSpec((tm, tk), lambda i, k: (i, k)),     # int8 A tile (streamed)
            pl.BlockSpec((tk, fout), lambda i, k: (k, 0)),   # xw K-tile (streamed)
            pl.BlockSpec((tm, 1), lambda i, k: (i, 0)),      # row-side D^-1/2
            _invariant_spec((1, fout), lambda i, k: (0, 0), single_buffer),  # bias
        ],
        out_specs=pl.BlockSpec((tm, fout), lambda i, k: (i, 0)),   # lane-dense
        scratch_shapes=[pltpu.VMEM((tm, fout), jnp.float32)],
        compiler_params=pltpu.CompilerParams(
            dimension_semantics=("parallel", "arbitrary"),
            vmem_limit_bytes=vmem_limit),
    )(a_pad, xw, d_pad, b_pad)


def student_gnn_forward(x, edge_index, params, *, single_buffer_invariants=True):
    w1, b1, w2, b2 = params
    n, fin = x.shape
    hidden = w1.shape[1]
    out_channels = w2.shape[1]

    h_pad = _round_up(hidden, _LANE)
    c_pad = _round_up(out_channels, _LANE)
    budget = _vmem_budget_bytes()
    n_pad, tm, tk = _choose_tiling(n, max(h_pad, c_pad), budget)

    a_pad, d_pad = build_graph_operands(edge_index, n, n_pad)

    # bf16 MXU operands (fp32 accumulation inside the kernels); zero padding.
    x_p = jnp.zeros((n_pad, fin), jnp.bfloat16).at[:n].set(x.astype(jnp.bfloat16))
    w1_p = jnp.zeros((fin, h_pad), jnp.bfloat16).at[:, :hidden].set(
        w1.astype(jnp.bfloat16))
    b1_p = jnp.zeros((1, h_pad), jnp.float32).at[:, :hidden].set(
        b1.reshape(1, hidden))
    w2_p = jnp.zeros((h_pad, c_pad), jnp.bfloat16).at[:hidden, :out_channels].set(
        w2.astype(jnp.bfloat16))
    b2_p = jnp.zeros((1, c_pad), jnp.float32).at[:, :out_channels].set(
        b2.reshape(1, out_channels))

    h = _gcn_layer(a_pad, d_pad, x_p, w1_p, b1_p,
                   tm=tm, tk=tk, out_dtype=jnp.bfloat16,
                   activation="relu", num_valid=hidden,
                   vmem_limit=budget, single_buffer=single_buffer_invariants)
    logp = _gcn_layer(a_pad, d_pad, h, w2_p, b2_p,
                      tm=tm, tk=tk, out_dtype=jnp.float32,
                      activation="log_softmax", num_valid=out_channels,
                      vmem_limit=budget, single_buffer=single_buffer_invariants)

    # TODO(synk): block-sparse A (PrefetchScalarGridSpec over nonzero column
    # blocks) would skip empty (tm, tk) tiles for realistic sparse graphs.
    return logp[:n, :out_channels]


def init_params(key, in_channels, hidden_channels, out_channels):
    k1, k2 = jax.random.split(key)
    # GCNConv: glorot-uniform weight, zero bias.
    s1 = jnp.sqrt(6.0 / (in_channels + hidden_channels))
    s2 = jnp.sqrt(6.0 / (hidden_channels + out_channels))
    w1 = jax.random.uniform(k1, (in_channels, hidden_channels), jnp.float32, -s1, s1)
    b1 = jnp.zeros((1, hidden_channels), jnp.float32)
    w2 = jax.random.uniform(k2, (hidden_channels, out_channels), jnp.float32, -s2, s2)
    b2 = jnp.zeros((1, out_channels), jnp.float32)
    return w1, b1, w2, b2


def reference_forward(x, edge_index, params):
    """Pure-JAX fp32 reference (PyG GCNConv semantics) for tolerance checks."""
    w1, b1, w2, b2 = params
    n = x.shape[0]
    a = jnp.zeros((n, n), jnp.float32).at[edge_index[1], edge_index[0]].add(1.0)
    a = a.at[jnp.arange(n), jnp.arange(n)].add(1.0)
    deg = a.sum(axis=1)
    dinv = jnp.where(deg > 0, jax.lax.rsqrt(deg), 0.0)
    a_hat = dinv[:, None] * a * dinv[None, :]
    h = jnp.maximum(a_hat @ (x @ w1) + b1, 0.0)
    z = a_hat @ (h @ w2) + b2
    return jax.nn.log_softmax(z, axis=1)


if __name__ == "__main__":
    key = jax.random.PRNGKey(0)
    k_x, k_e, k_p = jax.random.split(key, 3)

    num_nodes = 16
    in_channels, hidden_channels, out_channels = 8, 32, 4

    # node features [N, in_channels]
    x = jax.random.normal(k_x, (num_nodes, in_channels), jnp.float32)

    # deterministic synthetic graph: a ring plus a few random chords
    ring_src = jnp.arange(num_nodes)
    ring_dst = (ring_src + 1) % num_nodes
    extra_src = jax.random.randint(k_e, (8,), 0, num_nodes)
    extra_dst = (extra_src + 3) % num_nodes
    src = jnp.concatenate([ring_src, ring_dst, extra_src])
    dst = jnp.concatenate([ring_dst, ring_src, extra_dst])
    edge_index = jnp.stack([src, dst]).astype(jnp.int32)       # [2, E]

    params = init_params(k_p, in_channels, hidden_channels, out_channels)

    try:
        out = student_gnn_forward(x, edge_index, params)
    except Exception:
        # Fallback for jax builds that reject single-buffered BlockSpecs.
        out = student_gnn_forward(x, edge_index, params,
                                  single_buffer_invariants=False)
    jax.block_until_ready(out)

    assert out.shape == (num_nodes, out_channels)
    # rows of log_softmax must exp-sum to 1 (final softmax done in fp32)
    assert jnp.allclose(jnp.exp(out).sum(axis=1), 1.0, atol=1e-3)
    # tolerance check vs fp32 reference (bf16 MXU operands, fp32 accumulation)
    ref = reference_forward(x, edge_index, params)
    assert jnp.allclose(out, ref, atol=1e-1), float(jnp.abs(out - ref).max())

    print("KERNEL_OK")
</pallas_src>

<mosaic_0001>
module attributes {stable_mosaic.version = 11 : i64} {
  func.func @feature_transform_kernel(%arg0: i32, %arg1: memref<128x8xbf16, #tpu.memory_space<vmem>>, %arg2: memref<8x128xbf16, #tpu.memory_space<vmem>>, %arg3: memref<128x1xf32, #tpu.memory_space<vmem>>, %arg4: memref<128x128xbf16, #tpu.memory_space<vmem>>) attributes {dimension_semantics = [#tpu.dimension_semantics<parallel>], iteration_bounds = array<i64: 1>, scalar_prefetch = 0 : i64, scratch_operands = 0 : i64, tpu.core_type = #tpu.core_type<tc>, window_params = [{transform_indices = @transform_0, window_bounds = array<i64: 128, 8>}, {pipeline_mode = #tpu.pipeline_mode<synchronous>, transform_indices = @transform_1, window_bounds = array<i64: 8, 128>}, {transform_indices = @transform_2, window_bounds = array<i64: 128, 1>}, {transform_indices = @transform_3, window_bounds = array<i64: 128, 128>}]} {
    %c0 = arith.constant 0 : index
    %c0_0 = arith.constant 0 : index
    %0 = vector.load %arg1[%c0, %c0_0] : memref<128x8xbf16, #tpu.memory_space<vmem>>, vector<128x8xbf16>
    %c0_1 = arith.constant 0 : index
    %c0_2 = arith.constant 0 : index
    %1 = vector.load %arg2[%c0_1, %c0_2] : memref<8x128xbf16, #tpu.memory_space<vmem>>, vector<8x128xbf16>
    %cst = arith.constant dense<0.000000e+00> : vector<128x128xf32>
    %2 = tpu.matmul %0, %1, %cst {dimension_numbers = #tpu.dot_dimension_numbers<[1], [0], [0], [1], [0, 0, 1, 1], [], []>} : vector<128x8xbf16>, vector<8x128xbf16>, vector<128x128xf32> -> vector<128x128xf32>
    %c0_3 = arith.constant 0 : index
    %c0_4 = arith.constant 0 : index
    %3 = vector.load %arg3[%c0_3, %c0_4] : memref<128x1xf32, #tpu.memory_space<vmem>>, vector<128x1xf32>
    %4 = vector.broadcast %3 : vector<128x1xf32> to vector<128x128xf32>
    %5 = arith.mulf %2, %4 : vector<128x128xf32>
    %6 = arith.truncf %5 : vector<128x128xf32> to vector<128x128xbf16>
    %c0_5 = arith.constant 0 : index
    %c0_6 = arith.constant 0 : index
    %7 = vector.load %arg4[%c0_5, %c0_6] : memref<128x128xbf16, #tpu.memory_space<vmem>>, vector<128x128xbf16>
    tpu.vector_store %arg4[%c0_5, %c0_6], %6 {strides = array<i32>} : memref<128x128xbf16, #tpu.memory_space<vmem>>, vector<128x128xbf16>,
    return
  }
  func.func @transform_0(%arg0: i32) -> (i32, i32) {
    %c0_i32 = arith.constant 0 : i32
    %c0_i32_0 = arith.constant 0 : i32
    return %arg0, %c0_i32 : i32, i32
  }
  func.func @transform_1(%arg0: i32) -> (i32, i32) {
    %c0_i32 = arith.constant 0 : i32
    %c0_i32_0 = arith.constant 0 : i32
    %c0_i32_1 = arith.constant 0 : i32
    return %c0_i32, %c0_i32_0 : i32, i32
  }
  func.func @transform_2(%arg0: i32) -> (i32, i32) {
    %c0_i32 = arith.constant 0 : i32
    %c0_i32_0 = arith.constant 0 : i32
    return %arg0, %c0_i32 : i32, i32
  }
  func.func @transform_3(%arg0: i32) -> (i32, i32) {
    %c0_i32 = arith.constant 0 : i32
    %c0_i32_0 = arith.constant 0 : i32
    return %arg0, %c0_i32 : i32, i32
  }
}

module attributes {stable_mosaic.version = 11 : i64} {
  func.func @feature_transform_kernel(%arg0: i32, %arg1: memref<128x8xbf16, #tpu.memory_space<vmem>>, %arg2: memref<8x128xbf16, #tpu.memory_space<vmem>>, %arg3: memref<128x1xf32, #tpu.memory_space<vmem>>, %arg4: memref<128x128xbf16, #tpu.memory_space<vmem>>) attributes {dimension_semantics = [#tpu.dimension_semantics<parallel>], iteration_bounds = array<i64: 1>, scalar_prefetch = 0 : i64, scratch_operands = 0 : i64, tpu.core_type = #tpu.core_type<tc>, window_params = [{transform_indices = @transform_0, window_bounds = array<i64: 128, 8>}, {pipeline_mode = #tpu.pipeline_mode<synchronous>, transform_indices = @transform_1, window_bounds = array<i64: 8, 128>}, {transform_indices = @transform_2, window_bounds = array<i64: 128, 1>}, {transform_indices = @transform_3, window_bounds = array<i64: 128, 128>}]} {
    %c0 = arith.constant 0 : index
    %c0_0 = arith.constant 0 : index
    %0 = vector.load %arg1[%c0, %c0_0] : memref<128x8xbf16, #tpu.memory_space<vmem>>, vector<128x8xbf16>
    %c0_1 = arith.constant 0 : index
    %c0_2 = arith.constant 0 : index
    %1 = vector.load %arg2[%c0_1, %c0_2] : memref<8x128xbf16, #tpu.memory_space<vmem>>, vector<8x128xbf16>
    %cst = arith.constant dense<0.000000e+00> : vector<128x128xf32>
    %2 = tpu.matmul %0, %1, %cst {dimension_numbers = #tpu.dot_dimension_numbers<[1], [0], [0], [1], [0, 0, 1, 1], [], []>} : vector<128x8xbf16>, vector<8x128xbf16>, vector<128x128xf32> -> vector<128x128xf32>
    %c0_3 = arith.constant 0 : index
    %c0_4 = arith.constant 0 : index
    %3 = vector.load %arg3[%c0_3, %c0_4] : memref<128x1xf32, #tpu.memory_space<vmem>>, vector<128x1xf32>
    %4 = vector.broadcast %3 : vector<128x1xf32> to vector<128x128xf32>
    %5 = arith.mulf %2, %4 : vector<128x128xf32>
    %6 = arith.truncf %5 : vector<128x128xf32> to vector<128x128xbf16>
    %c0_5 = arith.constant 0 : index
    %c0_6 = arith.constant 0 : index
    %7 = vector.load %arg4[%c0_5, %c0_6] : memref<128x128xbf16, #tpu.memory_space<vmem>>, vector<128x128xbf16>
    tpu.vector_store %arg4[%c0_5, %c0_6], %6 {strides = array<i32>} : memref<128x128xbf16, #tpu.memory_space<vmem>>, vector<128x128xbf16>,
    return
  }
  func.func @transform_0(%arg0: i32) -> (i32, i32) {
    %c0_i32 = arith.constant 0 : i32
    %c0_i32_0 = arith.constant 0 : i32
    return %arg0, %c0_i32 : i32, i32
  }
  func.func @transform_1(%arg0: i32) -> (i32, i32) {
    %c0_i32 = arith.constant 0 : i32
    %c0_i32_0 = arith.constant 0 : i32
    %c0_i32_1 = arith.constant 0 : i32
    return %c0_i32, %c0_i32_0 : i32, i32
  }
  func.func @transform_2(%arg0: i32) -> (i32, i32) {
    %c0_i32 = arith.constant 0 : i32
    %c0_i32_0 = arith.constant 0 : i32
    return %arg0, %c0_i32 : i32, i32
  }
  func.func @transform_3(%arg0: i32) -> (i32, i32) {
    %c0_i32 = arith.constant 0 : i32
    %c0_i32_0 = arith.constant 0 : i32
    return %arg0, %c0_i32 : i32, i32
  }
}

</mosaic_0001>

<bundles_post_ra>
// kernel: tpu_custom_call.1
= control target key start
LH: loop header
LB: loop body
LE: loop exit
PB: predicated region body
PF: predicated region fallthrough
CT: control target
= control target key end

     0   :  { %vm98_vm0 = vcmask 1043456   ;;  %vm73_vm1 = vcmask 64512   ;;  %v571_v5 = vmov 0   ;;  %s690_s0 = inlined_call_operand.vmem [shape: bf16[128,8], index: 0, kind: input, shape index: {}]   ;;  %s691_s1 = inlined_call_operand.vmem [shape: bf16[8,128], index: 1, kind: input, shape index: {}]   ;;  %s692_s2 = inlined_call_operand.vmem [shape: f32[128,1], index: 2, kind: input, shape index: {}]   ;;  %s693_s3 = inlined_call_operand.hbm [shape: bf16[128,128], index: 3, kind: output, shape index: {}]  }
   0x1   :  { %v32_v0 = vld [vmem:[%s691_s1] sm:$0xf]  ;;  %v541_v4 = vld [vmem:[%s690_s0 + $0x8] sm:$0xff]   ;;  %538 = vset.pattern.permute.xlu1 %v571_v5  ;;  %537 = vset.pattern.permute.xlu0 %v571_v5  ;;  %v543_v7 = vld [vmem:[%s690_s0 + $0x10] sm:$0xff]  }
   0x2   :  { %v539_v1 = vld [vmem:[%s690_s0] sm:$0xff]   ;;  %531 = vmatprep.subr.msk.bf16.mxu0 %vm98_vm0, %v32_v0  ;;  %532 = vmatprep.subr.msk.bf16.mxu1 %vm98_vm0, %v32_v0  ;;  %v100_v2 = vsel %vm98_vm0, %v32_v0, 0  ;;  %v542_v6 = vld [vmem:[%s690_s0 + $0x28] sm:$0xff]   ;;  %v544_v8 = vld [vmem:[%s690_s0 + $0x30] sm:$0xff]  }
   0x3   :  { %512 = vmatpush3.bf16.msra.mxu0 %v100_v2  ;;  %530 = vmatpush3.bf16.msra.mxu1 %v100_v2  ;;  %v540_v3 = vld [vmem:[%s690_s0 + $0x20] sm:$0xff]   ;;  %v201_v9 = vld [vmem:[%s692_s2 + $0x10] sm:$0xff]  ;;  %v545_v10 = vld [vmem:[%s690_s0 + $0x18] sm:$0xff]  }
   0x4   :  { %513 = vmatprep.mubr.msk.bf16.mxu0 %vm73_vm1, %v539_v1  ;;  %521 = vmatprep.mubr.msk.bf16.mxu1 %vm73_vm1, %v540_v3  ;;  %v199_v11 = vld [vmem:[%s692_s2] sm:$0xff]  ;;  %v546_v12 = vld [vmem:[%s690_s0 + $0x38] sm:$0xff]   ;;  %v200_v14 = vld [vmem:[%s692_s2 + $0x8] sm:$0xff] }
   0x5   :  { %227 = vperm.xlu1 %538, %v201_v9   ;;  %217 = vperm.xlu0 %537, %v199_v11   ;;  %v202_v13 = vld [vmem:[%s692_s2 + $0x18] sm:$0xff]  ;;  %v204_v15 = vld [vmem:[%s692_s2 + $0x28] sm:$0xff] }
   0x6   :  { %514 = vmatmul.mubr.msk.bf16.vlgmr.msra.gmra.mrb[0].mxu0 %vm73_vm1, %v541_v4  ;;  %522 = vmatmul.mubr.msk.bf16.vlgmr.msra.gmra.mrb[0].mxu1 %vm73_vm1, %v542_v6 }
   0x7   :  { %517 = vmatprep.mubr.msk.bf16.mxu0 %vm73_vm1, %v543_v7  ;;  %525 = vmatprep.mubr.msk.bf16.mxu1 %vm73_vm1, %v544_v8 }
   0x9   :  { %232 = vperm.xlu1 %538, %v202_v13   ;;  %222 = vperm.xlu0 %537, %v200_v14  }
   0xe   :  { %518 = vmatmul.mubr.msk.bf16.gmra.mrb[4].mxu0 %vm73_vm1, %v545_v10  ;;  %526 = vmatmul.mubr.msk.bf16.gmra.mrb[4].mxu1 %vm73_vm1, %v546_v12 }
   0xf   :  { %8 = vsyncpa [#allocation3], 0  ;;  %v203_v16 = vld [vmem:[%s692_s2 + $0x20] sm:$0xff]  ;;  %242 = vperm.xlu1 %538, %v204_v15   ;;  %v206_v17 = vld [vmem:[%s692_s2 + $0x38] sm:$0xff] }
  0x10   :  { %237 = vperm.xlu0 %537, %v203_v16   ;;  %v205_v18 = vld [vmem:[%s692_s2 + $0x30] sm:$0xff]  ;;  %v208_v19 = vld [vmem:[%s692_s2 + $0x48] sm:$0xff]  ;;  %v207_v20 = vld [vmem:[%s692_s2 + $0x40] sm:$0xff] }
  0x11   :  { %v210_v21 = vld [vmem:[%s692_s2 + $0x58] sm:$0xff]  ;;  %v209_v22 = vld [vmem:[%s692_s2 + $0x50] sm:$0xff]  ;;  %v212_v23 = vld [vmem:[%s692_s2 + $0x68] sm:$0xff] }
  0x12   :  { %v211_v24 = vld [vmem:[%s692_s2 + $0x60] sm:$0xff]  ;;  %v214_v25 = vld [vmem:[%s692_s2 + $0x78] sm:$0xff]  ;;  %v213_v26 = vld [vmem:[%s692_s2 + $0x70] sm:$0xff]  ;;  %s572_s2 = smov [#allocation2]  }
  0x13   :  { %252 = vperm.xlu1 %538, %v206_v17   ;;  %s396_s5 = sshll.u32 %s572_s2, 4  ;;  %s397_s5 = int_to_ptr.vmem [resolvable:$true] %s396_s5 }
  0x14   :  { %247 = vperm.xlu0 %537, %v205_v18   ;;  %s547_s6 = scalar_lea.vmem %s397_s5, 1024  ;;  %p552_p1 = scmp.lt.s32.totalorder %s397_s5, %s397_s5 }
  0x15   :  { %p548_p0 = scmp.ne.s32.totalorder %s397_s5, %s547_s6  ;;  %p553_p2 = scmp.lt.s32.totalorder %s547_s6, %s547_s6 }
  0x17   :  { %262 = vperm.xlu1 %538, %v208_v19   ;;  %p554_p3 = por %p553_p2, %p552_p1 }
  0x18   :  { %257 = vperm.xlu0 %537, %v207_v20  }
  0x19   :  { %p555_p4 = pnand %p554_p3, %p548_p0 }
  0x1b   :  { %272 = vperm.xlu1 %538, %v210_v21  }
  0x1c   :  { %267 = vperm.xlu0 %537, %v209_v22  }
  0x1f   :  { %282 = vperm.xlu1 %538, %v212_v23  }
  0x20   :  { %277 = vperm.xlu0 %537, %v211_v24  }
  0x23   :  { %292 = vperm.xlu1 %538, %v214_v25  }
  0x24   :  { %287 = vperm.xlu0 %537, %v213_v26  }
  0x84   :  { %v228_v27 = vpop.permute.xlu1 %227  ;;  %v218_v28 = vpop.permute.xlu0 %217 }
  0x88   :  { %v233_v29 = vpop.permute.xlu1 %232  ;;  %v223_v30 = vpop.permute.xlu0 %222 }
  0x8e   :  { %v243_v31 = vpop.permute.xlu1 %242 }
  0x8f   :  { %v238_v32 = vpop.permute.xlu0 %237 }
  0x92   :  { %v253_v33 = vpop.permute.xlu1 %252 }
  0x93   :  { %v248_v34 = vpop.permute.xlu0 %247 }
  0x96   :  { %v263_v35 = vpop.permute.xlu1 %262 }
  0x97   :  { %v258_v36 = vpop.permute.xlu0 %257 }
  0x9a   :  { %v273_v37 = vpop.permute.xlu1 %272 }
  0x9b   :  { %v268_v38 = vpop.permute.xlu0 %267 }
  0x9e   :  { %v283_v39 = vpop.permute.xlu1 %282 }
  0x9f   :  { %v278_v40 = vpop.permute.xlu0 %277 }
  0xa2   :  { %v293_v60 = vpop.permute.xlu1 %292 }
  0xa3   :  { %v288_v62 = vpop.permute.xlu0 %287 }
  0xd9   :  { %v515_v41 = vpop.f32.mrb[0].mxu0  ;;  %v523_v42 = vpop.f32.mrb[0].mxu1 }
  0xda   :  { %v136_v43 = vpop.f32.mrb[1].mxu0  ;;  %v168_v44 = vpop.f32.mrb[1].mxu1  ;;  %v297_v46 = vmul.f32 %v515_v41, %v228_v27  ;;  %v305_v50 = vmul.f32 %v523_v42, %v268_v38 }
  0xdb   :  { %v516_v45 = vpop.f32.mrb[2].mxu0  ;;  %v524_v48 = vpop.f32.mrb[2].mxu1  ;;  %v295_v51 = vmul.f32 %v218_v28, %v136_v43  ;;  %v303_v55 = vmul.f32 %v258_v36, %v168_v44 }
  0xdc   :  { %v298_v47 = vmul.f32 %v516_v45, %v233_v29  ;;  %v139_v49 = vpop.f32.mrb[3].mxu0  ;;  %v306_v52 = vmul.f32 %v524_v48, %v273_v37  ;;  %v171_v54 = vpop.f32.mrb[3].mxu1 }
  0xdd   :  { %v296_v53 = vmul.f32 %v223_v30, %v139_v49  ;;  %v304_v57 = vmul.f32 %v263_v35, %v171_v54 }
  0xde   :  { %v463_v56 = vpack.c.bf16 %v298_v47, %v297_v46  ;;  %v483_v58 = vpack.c.bf16 %v306_v52, %v305_v50 }
  0xdf   :  { %v458_v59 = vpack.c.bf16 %v296_v53, %v295_v51  ;;  %v478_v61 = vpack.c.bf16 %v304_v57, %v303_v55 }
  0xe0   :  { %495 = vst [vmem:[#allocation2 + $0x8] sm:$0xff] %v463_v56   ;;  %499 = vst [vmem:[#allocation2 + $0x28] sm:$0xff] %v483_v58  }
  0xe1   :  { %459 = vst [vmem:[#allocation2] sm:$0xff] %v458_v59   ;;  %v519_v63 = vpop.f32.mrb[4].mxu0  ;;  %498 = vst [vmem:[#allocation2 + $0x20] sm:$0xff] %v478_v61   ;;  %v527_v0 = vpop.f32.mrb[4].mxu1 }
  0xe2   :  { %v152_v1 = vpop.f32.mrb[5].mxu0  ;;  %v184_v2 = vpop.f32.mrb[5].mxu1  ;;  %v301_v4 = vmul.f32 %v519_v63, %v248_v34  ;;  %v309_v8 = vmul.f32 %v527_v0, %v288_v62 }
  0xe3   :  { %v520_v3 = vpop.f32.mrb[6].mxu0  ;;  %v528_v6 = vpop.f32.mrb[6].mxu1  ;;  %v299_v9 = vmul.f32 %v238_v32, %v152_v1  ;;  %v307_v13 = vmul.f32 %v278_v40, %v184_v2 }
  0xe4   :  { %v302_v5 = vmul.f32 %v520_v3, %v253_v33  ;;  %v155_v7 = vpop.f32.mrb[7].mxu0  ;;  %v310_v10 = vmul.f32 %v528_v6, %v293_v60  ;;  %v187_v12 = vpop.f32.mrb[7].mxu1 }
  0xe5   :  { %v300_v11 = vmul.f32 %v243_v31, %v155_v7  ;;  %v308_v15 = vmul.f32 %v283_v39, %v187_v12 }
  0xe6   :  { %v473_v14 = vpack.c.bf16 %v302_v5, %v301_v4  ;;  %v493_v16 = vpack.c.bf16 %v310_v10, %v309_v8 }
  0xe7   :  { %v468_v17 = vpack.c.bf16 %v300_v11, %v299_v9  ;;  %v488_v18 = vpack.c.bf16 %v308_v15, %v307_v13 }
  0xe8   :  { %497 = vst [vmem:[#allocation2 + $0x18] sm:$0xff] %v473_v14   ;;  %501 = vst [vmem:[#allocation2 + $0x38] sm:$0xff] %v493_v16  }
  0xe9   :  { %496 = vst [vmem:[#allocation2 + $0x10] sm:$0xff] %v468_v17   ;;  %500 = vst [vmem:[#allocation2 + $0x30] sm:$0xff] %v488_v18  }
  0xea   :  { %558 = shalt.err (!%p555_p4)
}
  0xeb   :  { %s559_s9 = scalar_lea.hbm %s693_s3, 1024 }
  0xec   :  { %p560_p5 = scmp.ne.s32.totalorder %s693_s3, %s559_s9  ;;  %p563_p6 = scmp.lt.u32.totalorder %s559_s9, %s693_s3 }
  0xee   :  { %p565_p7 = pnand %p563_p6, %p560_p5 }
  0xf0   :  { %568 = shalt.err (!%p565_p7)
}
  0xf1   :  { %s573_s13 = smov 64   ;;  %s574_s14 = smov 4  }
  0xf2   :  { %402 = dma.vmem_to_hbm [thread:$0]  %s397_s5, 1024, %s693_s3, [#allocation3], %s573_s13, %s573_s13, %s574_s14  }
  0xf3   :  { %569 = dma.done.wait [#allocation3], 1024  }
  0xf4   :  { %570 = vsyncadd [#allocation3], 4294966272 }
  0xf5   :  { %406 = vsyncpa [#allocation3], 1 }

// kernel: tpu_custom_call.1
= control target key start
LH: loop header
LB: loop body
LE: loop exit
PB: predicated region body
PF: predicated region fallthrough
CT: control target
= control target key end

     0   :  { %vm98_vm0 = vcmask 1043456   ;;  %vm73_vm1 = vcmask 64512   ;;  %v571_v5 = vmov 0   ;;  %s690_s0 = inlined_call_operand.vmem [shape: bf16[128,8], index: 0, kind: input, shape index: {}]   ;;  %s691_s1 = inlined_call_operand.vmem [shape: bf16[8,128], index: 1, kind: input, shape index: {}]   ;;  %s692_s2 = inlined_call_operand.vmem [shape: f32[128,1], index: 2, kind: input, shape index: {}]   ;;  %s693_s3 = inlined_call_operand.hbm [shape: bf16[128,128], index: 3, kind: output, shape index: {}]  }
   0x1   :  { %v32_v0 = vld [vmem:[%s691_s1] sm:$0xf]  ;;  %v541_v4 = vld [vmem:[%s690_s0 + $0x8] sm:$0xff]   ;;  %538 = vset.pattern.permute.xlu1 %v571_v5  ;;  %537 = vset.pattern.permute.xlu0 %v571_v5  ;;  %v543_v7 = vld [vmem:[%s690_s0 + $0x10] sm:$0xff]  }
   0x2   :  { %v539_v1 = vld [vmem:[%s690_s0] sm:$0xff]   ;;  %531 = vmatprep.subr.msk.bf16.mxu0 %vm98_vm0, %v32_v0  ;;  %532 = vmatprep.subr.msk.bf16.mxu1 %vm98_vm0, %v32_v0  ;;  %v100_v2 = vsel %vm98_vm0, %v32_v0, 0  ;;  %v542_v6 = vld [vmem:[%s690_s0 + $0x28] sm:$0xff]   ;;  %v544_v8 = vld [vmem:[%s690_s0 + $0x30] sm:$0xff]  }
   0x3   :  { %512 = vmatpush3.bf16.msra.mxu0 %v100_v2  ;;  %530 = vmatpush3.bf16.msra.mxu1 %v100_v2  ;;  %v540_v3 = vld [vmem:[%s690_s0 + $0x20] sm:$0xff]   ;;  %v201_v9 = vld [vmem:[%s692_s2 + $0x10] sm:$0xff]  ;;  %v545_v10 = vld [vmem:[%s690_s0 + $0x18] sm:$0xff]  }
   0x4   :  { %513 = vmatprep.mubr.msk.bf16.mxu0 %vm73_vm1, %v539_v1  ;;  %521 = vmatprep.mubr.msk.bf16.mxu1 %vm73_vm1, %v540_v3  ;;  %v199_v11 = vld [vmem:[%s692_s2] sm:$0xff]  ;;  %v546_v12 = vld [vmem:[%s690_s0 + $0x38] sm:$0xff]   ;;  %v200_v14 = vld [vmem:[%s692_s2 + $0x8] sm:$0xff] }
   0x5   :  { %227 = vperm.xlu1 %538, %v201_v9   ;;  %217 = vperm.xlu0 %537, %v199_v11   ;;  %v202_v13 = vld [vmem:[%s692_s2 + $0x18] sm:$0xff]  ;;  %v204_v15 = vld [vmem:[%s692_s2 + $0x28] sm:$0xff] }
   0x6   :  { %514 = vmatmul.mubr.msk.bf16.vlgmr.msra.gmra.mrb[0].mxu0 %vm73_vm1, %v541_v4  ;;  %522 = vmatmul.mubr.msk.bf16.vlgmr.msra.gmra.mrb[0].mxu1 %vm73_vm1, %v542_v6 }
   0x7   :  { %517 = vmatprep.mubr.msk.bf16.mxu0 %vm73_vm1, %v543_v7  ;;  %525 = vmatprep.mubr.msk.bf16.mxu1 %vm73_vm1, %v544_v8 }
   0x9   :  { %232 = vperm.xlu1 %538, %v202_v13   ;;  %222 = vperm.xlu0 %537, %v200_v14  }
   0xe   :  { %518 = vmatmul.mubr.msk.bf16.gmra.mrb[4].mxu0 %vm73_vm1, %v545_v10  ;;  %526 = vmatmul.mubr.msk.bf16.gmra.mrb[4].mxu1 %vm73_vm1, %v546_v12 }
   0xf   :  { %8 = vsyncpa [#allocation3], 0  ;;  %v203_v16 = vld [vmem:[%s692_s2 + $0x20] sm:$0xff]  ;;  %242 = vperm.xlu1 %538, %v204_v15   ;;  %v206_v17 = vld [vmem:[%s692_s2 + $0x38] sm:$0xff] }
  0x10   :  { %237 = vperm.xlu0 %537, %v203_v16   ;;  %v205_v18 = vld [vmem:[%s692_s2 + $0x30] sm:$0xff]  ;;  %v208_v19 = vld [vmem:[%s692_s2 + $0x48] sm:$0xff]  ;;  %v207_v20 = vld [vmem:[%s692_s2 + $0x40] sm:$0xff] }
  0x11   :  { %v210_v21 = vld [vmem:[%s692_s2 + $0x58] sm:$0xff]  ;;  %v209_v22 = vld [vmem:[%s692_s2 + $0x50] sm:$0xff]  ;;  %v212_v23 = vld [vmem:[%s692_s2 + $0x68] sm:$0xff] }
  0x12   :  { %v211_v24 = vld [vmem:[%s692_s2 + $0x60] sm:$0xff]  ;;  %v214_v25 = vld [vmem:[%s692_s2 + $0x78] sm:$0xff]  ;;  %v213_v26 = vld [vmem:[%s692_s2 + $0x70] sm:$0xff]  ;;  %s572_s2 = smov [#allocation2]  }
  0x13   :  { %252 = vperm.xlu1 %538, %v206_v17   ;;  %s396_s5 = sshll.u32 %s572_s2, 4  ;;  %s397_s5 = int_to_ptr.vmem [resolvable:$true] %s396_s5 }
  0x14   :  { %247 = vperm.xlu0 %537, %v205_v18   ;;  %s547_s6 = scalar_lea.vmem %s397_s5, 1024  ;;  %p552_p1 = scmp.lt.s32.totalorder %s397_s5, %s397_s5 }
  0x15   :  { %p548_p0 = scmp.ne.s32.totalorder %s397_s5, %s547_s6  ;;  %p553_p2 = scmp.lt.s32.totalorder %s547_s6, %s547_s6 }
  0x17   :  { %262 = vperm.xlu1 %538, %v208_v19   ;;  %p554_p3 = por %p553_p2, %p552_p1 }
  0x18   :  { %257 = vperm.xlu0 %537, %v207_v20  }
  0x19   :  { %p555_p4 = pnand %p554_p3, %p548_p0 }
  0x1b   :  { %272 = vperm.xlu1 %538, %v210_v21  }
  0x1c   :  { %267 = vperm.xlu0 %537, %v209_v22  }
  0x1f   :  { %282 = vperm.xlu1 %538, %v212_v23  }
  0x20   :  { %277 = vperm.xlu0 %537, %v211_v24  }
  0x23   :  { %292 = vperm.xlu1 %538, %v214_v25  }
  0x24   :  { %287 = vperm.xlu0 %537, %v213_v26  }
  0x84   :  { %v228_v27 = vpop.permute.xlu1 %227  ;;  %v218_v28 = vpop.permute.xlu0 %217 }
  0x88   :  { %v233_v29 = vpop.permute.xlu1 %232  ;;  %v223_v30 = vpop.permute.xlu0 %222 }
  0x8e   :  { %v243_v31 = vpop.permute.xlu1 %242 }
  0x8f   :  { %v238_v32 = vpop.permute.xlu0 %237 }
  0x92   :  { %v253_v33 = vpop.permute.xlu1 %252 }
  0x93   :  { %v248_v34 = vpop.permute.xlu0 %247 }
  0x96   :  { %v263_v35 = vpop.permute.xlu1 %262 }
  0x97   :  { %v258_v36 = vpop.permute.xlu0 %257 }
  0x9a   :  { %v273_v37 = vpop.permute.xlu1 %272 }
  0x9b   :  { %v268_v38 = vpop.permute.xlu0 %267 }
  0x9e   :  { %v283_v39 = vpop.permute.xlu1 %282 }
  0x9f   :  { %v278_v40 = vpop.permute.xlu0 %277 }
  0xa2   :  { %v293_v60 = vpop.permute.xlu1 %292 }
  0xa3   :  { %v288_v62 = vpop.permute.xlu0 %287 }
  0xd9   :  { %v515_v41 = vpop.f32.mrb[0].mxu0  ;;  %v523_v42 = vpop.f32.mrb[0].mxu1 }
  0xda   :  { %v136_v43 = vpop.f32.mrb[1].mxu0  ;;  %v168_v44 = vpop.f32.mrb[1].mxu1  ;;  %v297_v46 = vmul.f32 %v515_v41, %v228_v27  ;;  %v305_v50 = vmul.f32 %v523_v42, %v268_v38 }
  0xdb   :  { %v516_v45 = vpop.f32.mrb[2].mxu0  ;;  %v524_v48 = vpop.f32.mrb[2].mxu1  ;;  %v295_v51 = vmul.f32 %v218_v28, %v136_v43  ;;  %v303_v55 = vmul.f32 %v258_v36, %v168_v44 }
  0xdc   :  { %v298_v47 = vmul.f32 %v516_v45, %v233_v29  ;;  %v139_v49 = vpop.f32.mrb[3].mxu0  ;;  %v306_v52 = vmul.f32 %v524_v48, %v273_v37  ;;  %v171_v54 = vpop.f32.mrb[3].mxu1 }
  0xdd   :  { %v296_v53 = vmul.f32 %v223_v30, %v139_v49  ;;  %v304_v57 = vmul.f32 %v263_v35, %v171_v54 }
  0xde   :  { %v463_v56 = vpack.c.bf16 %v298_v47, %v297_v46  ;;  %v483_v58 = vpack.c.bf16 %v306_v52, %v305_v50 }
  0xdf   :  { %v458_v59 = vpack.c.bf16 %v296_v53, %v295_v51  ;;  %v478_v61 = vpack.c.bf16 %v304_v57, %v303_v55 }
  0xe0   :  { %495 = vst [vmem:[#allocation2 + $0x8] sm:$0xff] %v463_v56   ;;  %499 = vst [vmem:[#allocation2 + $0x28] sm:$0xff] %v483_v58  }
  0xe1   :  { %459 = vst [vmem:[#allocation2] sm:$0xff] %v458_v59   ;;  %v519_v63 = vpop.f32.mrb[4].mxu0  ;;  %498 = vst [vmem:[#allocation2 + $0x20] sm:$0xff] %v478_v61   ;;  %v527_v0 = vpop.f32.mrb[4].mxu1 }
  0xe2   :  { %v152_v1 = vpop.f32.mrb[5].mxu0  ;;  %v184_v2 = vpop.f32.mrb[5].mxu1  ;;  %v301_v4 = vmul.f32 %v519_v63, %v248_v34  ;;  %v309_v8 = vmul.f32 %v527_v0, %v288_v62 }
  0xe3   :  { %v520_v3 = vpop.f32.mrb[6].mxu0  ;;  %v528_v6 = vpop.f32.mrb[6].mxu1  ;;  %v299_v9 = vmul.f32 %v238_v32, %v152_v1  ;;  %v307_v13 = vmul.f32 %v278_v40, %v184_v2 }
  0xe4   :  { %v302_v5 = vmul.f32 %v520_v3, %v253_v33  ;;  %v155_v7 = vpop.f32.mrb[7].mxu0  ;;  %v310_v10 = vmul.f32 %v528_v6, %v293_v60  ;;  %v187_v12 = vpop.f32.mrb[7].mxu1 }
  0xe5   :  { %v300_v11 = vmul.f32 %v243_v31, %v155_v7  ;;  %v308_v15 = vmul.f32 %v283_v39, %v187_v12 }
  0xe6   :  { %v473_v14 = vpack.c.bf16 %v302_v5, %v301_v4  ;;  %v493_v16 = vpack.c.bf16 %v310_v10, %v309_v8 }
  0xe7   :  { %v468_v17 = vpack.c.bf16 %v300_v11, %v299_v9  ;;  %v488_v18 = vpack.c.bf16 %v308_v15, %v307_v13 }
  0xe8   :  { %497 = vst [vmem:[#allocation2 + $0x18] sm:$0xff] %v473_v14   ;;  %501 = vst [vmem:[#allocation2 + $0x38] sm:$0xff] %v493_v16  }
  0xe9   :  { %496 = vst [vmem:[#allocation2 + $0x10] sm:$0xff] %v468_v17   ;;  %500 = vst [vmem:[#allocation2 + $0x30] sm:$0xff] %v488_v18  }
  0xea   :  { %558 = shalt.err (!%p555_p4)
}
  0xeb   :  { %s559_s9 = scalar_lea.hbm %s693_s3, 1024 }
  0xec   :  { %p560_p5 = scmp.ne.s32.totalorder %s693_s3, %s559_s9  ;;  %p563_p6 = scmp.lt.u32.totalorder %s559_s9, %s693_s3 }
  0xee   :  { %p565_p7 = pnand %p563_p6, %p560_p5 }
  0xf0   :  { %568 = shalt.err (!%p565_p7)
}
  0xf1   :  { %s573_s13 = smov 64   ;;  %s574_s14 = smov 4  }
  0xf2   :  { %402 = dma.vmem_to_hbm [thread:$0]  %s397_s5, 1024, %s693_s3, [#allocation3], %s573_s13, %s573_s13, %s574_s14  }
  0xf3   :  { %569 = dma.done.wait [#allocation3], 1024  }
  0xf4   :  { %570 = vsyncadd [#allocation3], 4294966272 }
  0xf5   :  { %406 = vsyncpa [#allocation3], 1 }

</bundles_post_ra>
